<compile_context>
chip_gen: v7x
topology: tpu7x:2x2x1
jax: 0.10.0
libtpu: 0.0.40
codegen_flags: <defaults>
</compile_context>

<pallas_src>
import math
import functools

import jax
import jax.numpy as jnp
from jax.experimental import pallas as pl
from jax.experimental.pallas import tpu as pltpu


def _round_up(x, m):
    return ((x + m - 1) // m) * m


def _margin_epilogue(x_ref, w_n, label_ref, out_ref, *, s, s_cos_m, s_sin_m,
                     th, s_mm, easy_margin, tn, mxu_dtype):
    """Normalize x tile, MXU cosine, ArcFace margin (scale folded), one-hot."""
    # x tile streamed as mxu_dtype; accumulate the sum-of-squares in f32.
    x = x_ref[...].astype(jnp.float32)                           # (TB, Dp)
    x_ssq = jnp.sum(x * x, axis=-1, keepdims=True)
    # F.normalize semantics: / max(||x||, 1e-12) == * rsqrt(max(ssq, 1e-24))
    x_n = (x * jax.lax.rsqrt(jnp.maximum(x_ssq, 1e-24))).astype(mxu_dtype)

    # cosine = x_n @ w_n.T: contract the last dims of both operands (standard
    # q.k^T pattern, no explicit transpose), f32 accumulation on the MXU.
    cosine = jax.lax.dot_general(
        x_n, w_n,
        dimension_numbers=(((1,), (1,)), ((), ())),
        preferred_element_type=jnp.float32)                      # (TB, TN)

    # ArcFace margin, f32 epilogue, with the scale s folded into constants.
    sine = jnp.sqrt(jnp.maximum(1.0 - cosine * cosine, 0.0))
    phi_s = cosine * s_cos_m - sine * s_sin_m                    # == s * phi
    cos_s = cosine * s                                           # == s * cosine
    if easy_margin:
        phi_s = jnp.where(cosine > 0.0, phi_s, cos_s)
    else:
        phi_s = jnp.where(cosine > th, phi_s, cos_s - s_mm)

    tb, tn_ = cosine.shape
    # Shift the (TB, 1) label by the N-tile base instead of adding the base to
    # the full (TB, TN) iota (removes a full-tile integer add).
    lbl = label_ref[...] - pl.program_id(0) * tn                 # (TB, 1)
    one_hot = jax.lax.broadcasted_iota(jnp.int32, (tb, tn_), 1) == lbl
    out_ref[...] = jnp.where(one_hot, phi_s, cos_s).astype(out_ref.dtype)


def _arcmargin_kernel_stream(x_ref, w_ref, label_ref, out_ref, w_n_ref, *,
                             s, s_cos_m, s_sin_m, th, s_mm, easy_margin, tn,
                             mxu_dtype):
    """Multi-B-tile path: weight tile is resident across the inner B sweep;
    normalize it once per N tile into the VMEM scratch."""
    @pl.when(pl.program_id(1) == 0)
    def _():
        w = w_ref[...].astype(jnp.float32)                       # (TN, Dp)
        w_ssq = jnp.sum(w * w, axis=-1, keepdims=True)
        w_n_ref[...] = (w * jax.lax.rsqrt(jnp.maximum(w_ssq, 1e-24))
                        ).astype(w_n_ref.dtype)

    _margin_epilogue(x_ref, w_n_ref[...], label_ref, out_ref, s=s,
                     s_cos_m=s_cos_m, s_sin_m=s_sin_m, th=th, s_mm=s_mm,
                     easy_margin=easy_margin, tn=tn, mxu_dtype=mxu_dtype)


def _arcmargin_kernel_prenorm(x_ref, w_ref, label_ref, out_ref, *,
                              s, s_cos_m, s_sin_m, th, s_mm, easy_margin, tn,
                              mxu_dtype):
    """Single-B-tile path: W already normalized in the wrapper, no scratch."""
    _margin_epilogue(x_ref, w_ref[...], label_ref, out_ref, s=s,
                     s_cos_m=s_cos_m, s_sin_m=s_sin_m, th=th, s_mm=s_mm,
                     easy_margin=easy_margin, tn=tn, mxu_dtype=mxu_dtype)


def arc_margin_product(x, weight, label, *, s=30.0, m=0.5, easy_margin=False,
                       mxu_dtype=jnp.bfloat16, tb=256, tn=2048,
                       vmem_budget_bytes=32 * 1024 * 1024):
    """x: (B, in_features), weight: (out_features, in_features), label: (B,).
    Returns (B, out_features) float32, matching ArcMarginProduct.forward."""
    B, D = x.shape
    N, D2 = weight.shape
    assert D == D2, "in_features mismatch"

    itemsize = jnp.dtype(mxu_dtype).itemsize
    Dp = _round_up(D, 128)

    def _plan_bytes(tb_, tn_, with_scratch):
        bts = 2 * tb_ * Dp * itemsize        # x tile, double-buffered
        bts += 2 * tn_ * Dp * itemsize       # W tile, double-buffered
        bts += 2 * tb_ * tn_ * 4             # f32 output tile, double-buffered
        bts += 2 * tb_ * 4                   # label tile
        if with_scratch:
            bts += tn_ * Dp * itemsize       # normalized-W scratch
        return bts

    # --- Tile plan: lane/sublane-dense, shrunk to fit the VMEM budget (the
    #     32 MiB budget keeps the plan safe on v7x's 64 MiB / 32 MiB-scoped).
    TB = min(tb, _round_up(B, 8))
    TN = min(tn, _round_up(N, 128))
    Bp = _round_up(B, TB)
    prenorm_w = (Bp // TB == 1)

    while TN > 128 and _plan_bytes(TB, TN, not prenorm_w) > vmem_budget_bytes:
        TN = _round_up(TN // 2, 128)
    while TB > 8 and _plan_bytes(TB, TN, not prenorm_w) > vmem_budget_bytes:
        TB = _round_up(TB // 2, 8)
        Bp = _round_up(B, TB)
        prenorm_w = (Bp // TB == 1)
    Np = _round_up(N, TN)

    # Megacore (v7x): keep >= 2 N tiles so the "parallel" axis shards both TCs.
    while Np // TN < 2 and TN > 512:
        TN = _round_up(TN // 2, 128)
        Np = _round_up(N, TN)

    plan = _plan_bytes(TB, TN, not prenorm_w)
    vmem_limit_bytes = int(min(48 * 2**20, max(32 * 2**20, plan * 3 // 2)))

    # --- Inputs: cast to mxu_dtype, fused into the pad copy when padding is
    #     needed; skip the pad entirely in the aligned case.
    if (Bp != B) or (Dp != D):
        xp = jnp.zeros((Bp, Dp), mxu_dtype).at[:B, :D].set(x.astype(mxu_dtype))
    else:
        xp = x.astype(mxu_dtype)

    if prenorm_w:
        # Single B tile: no reuse for in-kernel W normalization -> do it here
        # (f32, fused with the cast/pad) and drop the kernel scratch.
        w32 = weight.astype(jnp.float32)
        w32 = w32 * jax.lax.rsqrt(
            jnp.maximum(jnp.sum(w32 * w32, axis=-1, keepdims=True), 1e-24))
        w_src = w32
    else:
        w_src = weight
    if (Np != N) or (Dp != D):
        wp = jnp.zeros((Np, Dp), mxu_dtype).at[:N, :D].set(
            w_src.astype(mxu_dtype))
    else:
        wp = w_src.astype(mxu_dtype)

    lbl2d = label.astype(jnp.int32).reshape(B, 1)
    if Bp != B:
        # Padded rows map to column 0; they are sliced off below.
        lp = jnp.zeros((Bp, 1), jnp.int32).at[:B].set(lbl2d)
    else:
        lp = lbl2d

    # --- Margin constants with the scale s folded in.
    const_kwargs = dict(
        s=float(s),
        s_cos_m=float(s) * math.cos(m),
        s_sin_m=float(s) * math.sin(m),
        th=math.cos(math.pi - m),
        s_mm=float(s) * math.sin(math.pi - m) * m,
        easy_margin=easy_margin,
        tn=TN,
        mxu_dtype=mxu_dtype,
    )

    if prenorm_w:
        kernel = functools.partial(_arcmargin_kernel_prenorm, **const_kwargs)
        scratch_shapes = []
    else:
        kernel = functools.partial(_arcmargin_kernel_stream, **const_kwargs)
        scratch_shapes = [pltpu.VMEM((TN, Dp), mxu_dtype)]

    out = pl.pallas_call(
        kernel,
        out_shape=jax.ShapeDtypeStruct((Bp, Np), jnp.float32),
        grid_spec=pltpu.PrefetchScalarGridSpec(
            num_scalar_prefetch=0,
            # N outermost, B innermost -> W tile resident across the B sweep.
            grid=(Np // TN, Bp // TB),
            in_specs=[
                pl.BlockSpec((TB, Dp), lambda n, b: (b, 0)),   # x tile
                pl.BlockSpec((TN, Dp), lambda n, b: (n, 0)),   # W tile (const in b)
                pl.BlockSpec((TB, 1), lambda n, b: (b, 0)),    # label tile
            ],
            out_specs=pl.BlockSpec((TB, TN), lambda n, b: (b, n)),
            scratch_shapes=scratch_shapes,
        ),
        compiler_params=pltpu.CompilerParams(
            # N axis parallel (megacore shards it); B axis arbitrary so the
            # once-per-N-tile scratch init at program_id(1)==0 stays correct.
            dimension_semantics=("parallel", "arbitrary"),
            vmem_limit_bytes=vmem_limit_bytes),
    )(xp, wp, lp)

    if (Bp != B) or (Np != N):
        out = out[:B, :N]
    return out


if __name__ == "__main__":
    def reference(x, weight, label, s=30.0, m=0.5, easy_margin=False):
        x_n = x / jnp.maximum(jnp.linalg.norm(x, axis=1, keepdims=True), 1e-12)
        w_n = weight / jnp.maximum(
            jnp.linalg.norm(weight, axis=1, keepdims=True), 1e-12)
        cosine = x_n @ w_n.T
        sine = jnp.sqrt(jnp.maximum(1.0 - cosine ** 2, 0.0))
        phi = cosine * math.cos(m) - sine * math.sin(m)
        if easy_margin:
            phi = jnp.where(cosine > 0.0, phi, cosine)
        else:
            phi = jnp.where(cosine > math.cos(math.pi - m), phi,
                            cosine - math.sin(math.pi - m) * m)
        one_hot = jax.nn.one_hot(label, weight.shape[0], dtype=jnp.float32)
        return (one_hot * phi + (1.0 - one_hot) * cosine) * s

    # --- Case 1: single-B-tile (pre-normalized W path), padded feature dim.
    B, in_f, out_f = 8, 32, 128
    kx, kw, kl = jax.random.split(jax.random.PRNGKey(0), 3)
    x = jax.random.normal(kx, (B, in_f), dtype=jnp.float32)
    bound = math.sqrt(6.0 / (in_f + out_f))              # nn.init.xavier_uniform_
    w = jax.random.uniform(kw, (out_f, in_f), jnp.float32, -bound, bound)
    lbl = jax.random.randint(kl, (B,), 0, out_f, dtype=jnp.int32)

    ref = reference(x, w, lbl)

    # f32-MXU path: strict parity with the PyTorch module.
    out_f32 = jax.block_until_ready(
        arc_margin_product(x, w, lbl, mxu_dtype=jnp.float32))
    assert out_f32.shape == (B, out_f)
    assert jnp.allclose(out_f32, ref, atol=1e-4, rtol=1e-4)

    # bf16-input path (default; halves DMA bytes, full-rate MXU).
    out_bf16 = jax.block_until_ready(arc_margin_product(x, w, lbl))
    assert bool(jnp.all(jnp.isfinite(out_bf16)))
    assert float(jnp.max(jnp.abs(out_bf16 - ref))) < 0.5

    # --- Case 2: multi-B-tile streamed path (in-kernel W normalization into
    #     the VMEM scratch), multiple N tiles; tiny tiles to exercise the
    #     pipeline at toy shapes.
    B2, in_f2, out_f2 = 16, 32, 256
    kx2, kw2, kl2 = jax.random.split(jax.random.PRNGKey(1), 3)
    x2 = jax.random.normal(kx2, (B2, in_f2), dtype=jnp.float32)
    bound2 = math.sqrt(6.0 / (in_f2 + out_f2))
    w2 = jax.random.uniform(kw2, (out_f2, in_f2), jnp.float32, -bound2, bound2)
    lbl2 = jax.random.randint(kl2, (B2,), 0, out_f2, dtype=jnp.int32)

    out2 = jax.block_until_ready(
        arc_margin_product(x2, w2, lbl2, mxu_dtype=jnp.float32, tb=8, tn=128))
    ref2 = reference(x2, w2, lbl2)
    assert out2.shape == (B2, out_f2)
    assert jnp.allclose(out2, ref2, atol=1e-4, rtol=1e-4)

    print("KERNEL_OK")
</pallas_src>

<mosaic_0001>
module attributes {stable_mosaic.version = 11 : i64} {
  func.func @_arcmargin_kernel_prenorm(%arg0: i32, %arg1: i32, %arg2: memref<8x128xf32, #tpu.memory_space<vmem>>, %arg3: memref<128x128xf32, #tpu.memory_space<vmem>>, %arg4: memref<8x1xi32, #tpu.memory_space<vmem>>, %arg5: memref<8x128xf32, #tpu.memory_space<vmem>>) attributes {dimension_semantics = [#tpu.dimension_semantics<parallel>, #tpu.dimension_semantics<arbitrary>], iteration_bounds = array<i64: 1, 1>, scalar_prefetch = 0 : i64, scratch_operands = 0 : i64, tpu.core_type = #tpu.core_type<tc>, window_params = [{transform_indices = @transform_0, window_bounds = array<i64: 8, 128>}, {transform_indices = @transform_1, window_bounds = array<i64: 128, 128>}, {transform_indices = @transform_2, window_bounds = array<i64: 8, 1>}, {transform_indices = @transform_3, window_bounds = array<i64: 8, 128>}]} {
    %c0 = arith.constant 0 : index
    %c0_0 = arith.constant 0 : index
    %0 = vector.load %arg3[%c0, %c0_0] : memref<128x128xf32, #tpu.memory_space<vmem>>, vector<128x128xf32>
    %c0_1 = arith.constant 0 : index
    %c0_2 = arith.constant 0 : index
    %1 = vector.load %arg2[%c0_1, %c0_2] : memref<8x128xf32, #tpu.memory_space<vmem>>, vector<8x128xf32>
    %2 = arith.mulf %1, %1 : vector<8x128xf32>
    %cst = arith.constant dense<0.000000e+00> : vector<8xf32>
    %3 = vector.multi_reduction <add>, %2, %cst [1] : vector<8x128xf32> to vector<8xf32>
    %4 = vector.shape_cast %3 : vector<8xf32> to vector<8x1xf32>
    %cst_3 = arith.constant 1.000000e-24 : f32
    %5 = vector.broadcast %cst_3 : f32 to vector<8x1xf32>
    %6 = arith.maximumf %4, %5 : vector<8x1xf32>
    %7 = math.rsqrt %6 : vector<8x1xf32>
    %8 = vector.broadcast %7 : vector<8x1xf32> to vector<8x128xf32>
    %9 = arith.mulf %1, %8 : vector<8x128xf32>
    %cst_4 = arith.constant dense<0.000000e+00> : vector<8x128xf32>
    %10 = tpu.matmul %9, %0, %cst_4 {dimension_numbers = #tpu.dot_dimension_numbers<[1], [1], [0], [0], [0, 0, 1, 0], [], []>} : vector<8x128xf32>, vector<128x128xf32>, vector<8x128xf32> -> vector<8x128xf32>
    %11 = arith.mulf %10, %10 : vector<8x128xf32>
    %cst_5 = arith.constant 1.000000e+00 : f32
    %12 = vector.broadcast %cst_5 : f32 to vector<8x128xf32>
    %13 = arith.subf %12, %11 : vector<8x128xf32>
    %cst_6 = arith.constant 0.000000e+00 : f32
    %14 = vector.broadcast %cst_6 : f32 to vector<8x128xf32>
    %15 = arith.maximumf %13, %14 : vector<8x128xf32>
    %16 = math.sqrt %15 : vector<8x128xf32>
    %cst_7 = arith.constant 26.3274765 : f32
    %17 = vector.broadcast %cst_7 : f32 to vector<8x128xf32>
    %18 = arith.mulf %10, %17 : vector<8x128xf32>
    %cst_8 = arith.constant 14.3827658 : f32
    %19 = vector.broadcast %cst_8 : f32 to vector<8x128xf32>
    %20 = arith.mulf %16, %19 : vector<8x128xf32>
    %21 = arith.subf %18, %20 : vector<8x128xf32>
    %cst_9 = arith.constant 3.000000e+01 : f32
    %22 = vector.broadcast %cst_9 : f32 to vector<8x128xf32>
    %23 = arith.mulf %10, %22 : vector<8x128xf32>
    %cst_10 = arith.constant -0.87758255 : f32
    %24 = vector.broadcast %cst_10 : f32 to vector<8x128xf32>
    %25 = arith.cmpf ogt, %10, %24 : vector<8x128xf32>
    %cst_11 = arith.constant 7.19138288 : f32
    %26 = vector.broadcast %cst_11 : f32 to vector<8x128xf32>
    %27 = arith.subf %23, %26 : vector<8x128xf32>
    %28 = arith.select %25, %21, %27 : vector<8x128xi1>, vector<8x128xf32>
    %c0_12 = arith.constant 0 : index
    %c0_13 = arith.constant 0 : index
    %29 = vector.load %arg4[%c0_12, %c0_13] : memref<8x1xi32, #tpu.memory_space<vmem>>, vector<8x1xi32>
    %c128_i32 = arith.constant 128 : i32
    %30 = arith.muli %arg0, %c128_i32 : i32
    %31 = vector.broadcast %30 : i32 to vector<8x1xi32>
    %32 = arith.subi %29, %31 : vector<8x1xi32>
    %33 = tpu.iota {dimensions = array<i32: 1>} : vector<8x128xi32>
    %34 = vector.broadcast %32 : vector<8x1xi32> to vector<8x128xi32>
    %35 = arith.cmpi eq, %33, %34 : vector<8x128xi32>
    %36 = arith.select %35, %28, %23 : vector<8x128xi1>, vector<8x128xf32>
    %c0_14 = arith.constant 0 : index
    %c0_15 = arith.constant 0 : index
    %37 = vector.load %arg5[%c0_14, %c0_15] : memref<8x128xf32, #tpu.memory_space<vmem>>, vector<8x128xf32>
    tpu.vector_store %arg5[%c0_14, %c0_15], %36 {strides = array<i32>} : memref<8x128xf32, #tpu.memory_space<vmem>>, vector<8x128xf32>,
    return
  }
  func.func @transform_0(%arg0: i32, %arg1: i32) -> (i32, i32) {
    %c0_i32 = arith.constant 0 : i32
    %c0_i32_0 = arith.constant 0 : i32
    return %arg1, %c0_i32 : i32, i32
  }
  func.func @transform_1(%arg0: i32, %arg1: i32) -> (i32, i32) {
    %c0_i32 = arith.constant 0 : i32
    %c0_i32_0 = arith.constant 0 : i32
    return %arg0, %c0_i32 : i32, i32
  }
  func.func @transform_2(%arg0: i32, %arg1: i32) -> (i32, i32) {
    %c0_i32 = arith.constant 0 : i32
    %c0_i32_0 = arith.constant 0 : i32
    return %arg1, %c0_i32 : i32, i32
  }
  func.func @transform_3(%arg0: i32, %arg1: i32) -> (i32, i32) {
    %c0_i32 = arith.constant 0 : i32
    return %arg1, %arg0 : i32, i32
  }
}

</mosaic_0001>

<bundles_post_ra>
// kernel: tpu_custom_call.1
= control target key start
LH: loop header
LB: loop body
LE: loop exit
PB: predicated region body
PF: predicated region fallthrough
CT: control target
= control target key end

     0   :  { %8 = vsyncpa [#allocation3], 0  ;;  %s362_s0 = inlined_call_operand.vmem [shape: f32[8,128], index: 0, kind: input, shape index: {}]   ;;  %s363_s1 = inlined_call_operand.hbm [shape: f32[128,128], index: 1, kind: input, shape index: {}]   ;;  %s364_s2 = inlined_call_operand.vmem [shape: s32[8,1], index: 2, kind: input, shape index: {}]   ;;  %s365_s3 = inlined_call_operand.hbm [shape: f32[8,128], index: 3, kind: output, shape index: {}]  }
   0x1   :  { %9 = vsyncpa [#allocation4], 0  ;;  %s304_s12 = smov [#allocation2]   ;;  %s256_s16 = scalar_lea.hbm %s363_s1, 2048 }
   0x2   :  { %s17_s13 = sshll.u32 %s304_s12, 4  ;;  %p257_p0 = scmp.ne.s32.totalorder %s363_s1, %s256_s16  ;;  %s18_s13 = int_to_ptr.vmem [resolvable:$true] %s17_s13 }
   0x3   :  { %p260_p1 = scmp.lt.u32.totalorder %s256_s16, %s363_s1 }
   0x5   :  { %p262_p2 = pnand %p260_p1, %p257_p0 }
   0x7   :  { %265 = shalt.err (!%p262_p2)
}
   0x8   :  { %s266_s21 = scalar_lea.vmem %s18_s13, 2048  ;;  %p271_p4 = scmp.lt.s32.totalorder %s18_s13, %s18_s13 }
   0x9   :  { %p267_p3 = scmp.ne.s32.totalorder %s18_s13, %s266_s21  ;;  %p272_p5 = scmp.lt.s32.totalorder %s266_s21, %s266_s21 }
   0xb   :  { %p273_p6 = por %p272_p5, %p271_p4 }
   0xd   :  { %p274_p7 = pnand %p273_p6, %p267_p3 }
   0xf   :  { %277 = shalt.err (!%p274_p7)
}
  0x10   :  { %s305_s22 = smov 128   ;;  %s306_s23 = smov 8  }
  0x11   :  { %23 = dma.hbm_to_vmem [thread:$0]  %s363_s1, 2048, %s18_s13, [#allocation3], %s305_s22, %s305_s22, %s306_s23  }
  0x12   :  { %300 = dma.done.wait [#allocation3], 2048  }
  0x13   :  { %301 = vsyncadd [#allocation3], 4294965248  ;;  %v307_v0 = vmov 0.0|0.0   ;;  %v45_v1 = vld [vmem:[%s362_s0] sm:$0xff]  ;;  %v30_v3 = vld [vmem:[#allocation2 + $0x8] sm:$0xff]  ;;  %vm308_vm0 = vmmov 0   ;;  %v143_v39 = vlaneseq }
  0x14   :  { %219 = vmatprep.subr.bf16.mxu0 %v307_v0  ;;  %v29_v2 = vld [vmem:[#allocation2] sm:$0xff]  ;;  %v46_v4 = vmul.f32 %v45_v1, %v45_v1  ;;  %v31_v6 = vld [vmem:[#allocation2 + $0x10] sm:$0xff]  ;;  %v32_v7 = vld [vmem:[#allocation2 + $0x18] sm:$0xff]  ;;  %v309_v14 = vmov 0.0   ;;  %v310_v20 = vmov 0  }
  0x15   :  { %v220_v5 = vpack.c.bf16 %v30_v3, %v29_v2  ;;  %v223_v8 = vpack.c.bf16 %v32_v7, %v31_v6  ;;  %v33_v9 = vld [vmem:[#allocation2 + $0x20] sm:$0xff]  ;;  %v34_v10 = vld [vmem:[#allocation2 + $0x28] sm:$0xff]  ;;  %v35_v12 = vld [vmem:[#allocation2 + $0x30] sm:$0xff]  ;;  %216 = vmatprep.mubr.msk.f32.mxu0 %vm308_vm0, %v309_v14  ;;  %251 = vset.pattern.permute.xlu0 %v310_v20  ;;  %v144_v45 = vand.u32 127, %v143_v39 }
  0x16   :  { %47 = vadd.xlane.f32.xlu0 %v46_v4  ;;  %v226_v11 = vpack.c.bf16 %v34_v10, %v33_v9  ;;  %v36_v13 = vld [vmem:[#allocation2 + $0x38] sm:$0xff]  ;;  %v37_v16 = vld [vmem:[#allocation2 + $0x40] sm:$0xff]  ;;  %v38_v17 = vld [vmem:[#allocation2 + $0x48] sm:$0xff] }
  0x17   :  { %221 = vmatpush3.bf16.xpose.msra.mxu0 %v220_v5  ;;  %v229_v15 = vpack.c.bf16 %v36_v13, %v35_v12  ;;  %v232_v18 = vpack.c.bf16 %v38_v17, %v37_v16  ;;  %v139_v19 = vld [vmem:[%s364_s2] sm:$0xff]  ;;  %v39_v21 = vld [vmem:[#allocation2 + $0x50] sm:$0xff]  ;;  %v40_v22 = vld [vmem:[#allocation2 + $0x58] sm:$0xff]  ;;  %s311_s2 = smov [#allocation5]  }
  0x18   :  { %222 = vmatprep.subr.bf16.mxu0 %v307_v0  ;;  %v235_v23 = vpack.c.bf16 %v40_v22, %v39_v21  ;;  %v41_v24 = vld [vmem:[#allocation2 + $0x60] sm:$0xff]  ;;  %v42_v25 = vld [vmem:[#allocation2 + $0x68] sm:$0xff]  ;;  %v43_v27 = vld [vmem:[#allocation2 + $0x70] sm:$0xff]  ;;  %s157_s28 = sshll.u32 %s311_s2, 4  ;;  %s158_s28 = int_to_ptr.vmem [resolvable:$true] %s157_s28 }
  0x19   :  { %v238_v26 = vpack.c.bf16 %v42_v25, %v41_v24  ;;  %v44_v28 = vld [vmem:[#allocation2 + $0x78] sm:$0xff]  ;;  %s278_s29 = scalar_lea.vmem %s158_s28, 128  ;;  %p283_p9 = scmp.lt.s32.totalorder %s158_s28, %s158_s28 }
  0x1a   :  { %v241_v29 = vpack.c.bf16 %v44_v28, %v43_v27  ;;  %p279_p8 = scmp.ne.s32.totalorder %s158_s28, %s278_s29  ;;  %p284_p10 = scmp.lt.s32.totalorder %s278_s29, %s278_s29 }
  0x1c   :  { %p285_p11 = por %p284_p10, %p283_p9 }
  0x1e   :  { %p286_p12 = pnand %p285_p11, %p279_p8 }
  0x1f   :  { %224 = vmatpush3.bf16.xpose.msra.mxu0 %v223_v8 }
  0x20   :  { %225 = vmatprep.subr.bf16.mxu0 %v307_v0 }
  0x27   :  { %227 = vmatpush3.bf16.xpose.msra.mxu0 %v226_v11 }
  0x28   :  { %228 = vmatprep.subr.bf16.mxu0 %v307_v0 }
  0x2c   :  { %146 = vperm.xlu0 %251, %v139_v19  }
  0x2f   :  { %230 = vmatpush3.bf16.xpose.msra.mxu0 %v229_v15 }
  0x30   :  { %231 = vmatprep.subr.bf16.mxu0 %v307_v0 }
  0x37   :  { %233 = vmatpush3.bf16.xpose.msra.mxu0 %v232_v18 }
  0x38   :  { %234 = vmatprep.subr.bf16.mxu0 %v307_v0 }
  0x3f   :  { %236 = vmatpush3.bf16.xpose.msra.mxu0 %v235_v23 }
  0x40   :  { %237 = vmatprep.subr.bf16.mxu0 %v307_v0 }
  0x47   :  { %239 = vmatpush3.bf16.xpose.msra.mxu0 %v238_v26 }
  0x48   :  { %240 = vmatprep.subr.bf16.mxu0 %v307_v0 }
  0x4f   :  { %242 = vmatpush3.bf16.xpose.msra.mxu0 %v241_v29 }
  0xa3   :  { %v48_v30 = vpop.xlane.xlu0 %47 }
  0xa4   :  { %v49_v31 = vmax.f32 %v48_v30, 1e-24 }
  0xa6   :  { %252 = vrsqrt.f32 %v49_v31 }
  0xab   :  { %v147_v47 = vpop.permute.xlu0 %146 }
  0xac   :  { %vm148_vm3 = vcmp.eq.s32.totalorder %v144_v45, %v147_v47 }
  0xb0   :  { %v253_v32 = vpop.eup %252 }
  0xb1   :  { %v51_v33 = vmul.f32 %v253_v32, %v45_v1 }
  0xb3   :  { %217 = vmatmul.mubr.f32.vlgmr.msra.gmra.mrb[0].mxu0 %v51_v33 }
 0x186   :  { %v118_v34 = vpop.f32.mrb[0].mxu0 }
 0x187   :  { %v122_v35 = vmul.f32 %v118_v34, %v118_v34  ;;  %v218_v36 = vpop.f32.mrb[1].mxu0  ;;  %v135_v44 = vmul.f32 30.0, %v118_v34  ;;  %v132_v48 = vmul.f32 26.327477, %v118_v34  ;;  %vm136_vm4 = vcmp.gt.f32.partialorder %v118_v34, -0.87758255 }
 0x189   :  { %v123_v37 = vsub.f32 1.0, %v122_v35  ;;  %v166_v51 = vadd.f32 -7.191383, %v135_v44 }
 0x18b   :  { %v124_v38 = vmax.f32 %v123_v37, 0.0 }
 0x18d   :  { %254 = vrsqrt.f32 %v124_v38  ;;  %vm127_vm1 = vcmp.eq.f32.partialorder %v124_v38, inf  ;;  %v130_v42 = vand.u32 2147483648, %v124_v38  ;;  %vm129_vm2 = vcmp.eq.f32.partialorder %v124_v38, 0.0 }
 0x197   :  { %v255_v40 = vpop.eup %254 }
 0x198   :  { %v126_v41 = vmul.f32 %v255_v40, %v124_v38 }
 0x19a   :  { %v128_v43 = vsel %vm127_vm1, %v124_v38, %v126_v41 }
 0x19b   :  { %v131_v46 = vsel %vm129_vm2, %v130_v42, %v128_v43 }
 0x19c   :  { %v133_v49 = vmul.f32 14.382766, %v131_v46 }
 0x19e   :  { %v134_v50 = vsub.f32 %v132_v48, %v133_v49 }
 0x1a0   :  { %v138_v52 = vsel %vm136_vm4, %v134_v50, %v166_v51 }
 0x1a1   :  { %v149_v53 = vsel %vm148_vm3, %v138_v52, %v135_v44 }
 0x1a2   :  { %150 = vst [vmem:[#allocation5] sm:$0xff] %v149_v53 }
 0x1a3   :  { %289 = shalt.err (!%p286_p12)
}
 0x1a4   :  { %s290_s5 = scalar_lea.hbm %s365_s3, 128 }
 0x1a5   :  { %p291_p13 = scmp.ne.s32.totalorder %s365_s3, %s290_s5  ;;  %p294_p0 = scmp.lt.u32.totalorder %s290_s5, %s365_s3 }
 0x1a7   :  { %p296_p1 = pnand %p294_p0, %p291_p13 }
 0x1a9   :  { %299 = shalt.err (!%p296_p1)
}
 0x1aa   :  { %160 = dma.vmem_to_hbm [thread:$0]  %s158_s28, 128, %s365_s3, [#allocation4]  }
 0x1ab   :  { %302 = dma.done.wait [#allocation4], 128  }
 0x1ac   :  { %303 = vsyncadd [#allocation4], 4294967168 }
 0x1ad   :  { %164 = vsyncpa [#allocation3], 1 }
 0x1ae   :  { %165 = vsyncpa [#allocation4], 1 }

</bundles_post_ra>
